<compile_context>
chip_gen: v7x
topology: tpu7x:2x2x1
jax: 0.10.0
libtpu: 0.0.40
codegen_flags: <defaults>
</compile_context>

<pallas_src>
import functools
import math

import jax
import jax.numpy as jnp
from jax import lax
from jax.experimental import pallas as pl
from jax.experimental.pallas import tpu as pltpu


_SUBCHUNK = 256                        # rows per inner compute chunk (~64 KiB f32 hidden)
_VMEM_TILE_BUDGET = 24 * 1024 * 1024   # budget used when sizing the row tile
_MAX_TILE_N = 8192                     # big tiles amortize ~0.35 us/grid-step overhead


def _round_up(v, m):
    return ((v + m - 1) // m) * m


def _choose_tile_n(n_rows, input_size, hidden, num_outputs, out_bytes):
    """Largest row tile fitting the VMEM budget.

    x tile is budgeted at 4 B/elem (f32 in VMEM; the bf16 cast happens in-kernel).
    """
    per_row = 2 * input_size * 4 + 2 * num_outputs * out_bytes      # dbl-buffered x + out
    fixed = 2 * ((input_size * hidden + hidden * num_outputs) * 2   # resident weights (bf16)
                 + (hidden + num_outputs) * 4)                      # biases (f32)
    tile = max(_SUBCHUNK, (_VMEM_TILE_BUDGET - fixed) // per_row)
    tile = min(tile, _MAX_TILE_N)
    if n_rows >= 2 * _SUBCHUNK:
        # Keep >=2 grid steps so v7x can split row tiles across both TensorCores.
        tile = min(tile, _round_up(pl.cdiv(n_rows, 2), _SUBCHUNK))
    if tile >= n_rows:
        return n_rows                                    # single full-array block
    return max(_SUBCHUNK, (tile // _SUBCHUNK) * _SUBCHUNK)


def qa_head_kernel(x_ref, w1_ref, b1_ref, w2_ref, b2_ref, o_ref, *,
                   chunk, compute_dtype):
    # x_ref:  [TILE_N, input_size]        f32 (cast to compute dtype in-kernel)
    # w1_ref: [input_size, hidden]        compute dtype (VMEM-resident)
    # b1_ref: [1, hidden]                 f32
    # w2_ref: [hidden, num_outputs]       compute dtype (VMEM-resident)
    # b2_ref: [1, num_outputs]            f32
    # o_ref:  [TILE_N, num_outputs]
    w1 = w1_ref[...]
    b1 = b1_ref[...]
    w2 = w2_ref[...]
    b2 = b2_ref[...]
    n_chunks = x_ref.shape[0] // chunk   # static

    def body(c, carry):
        r = pl.multiple_of(c * chunk, chunk)
        xc = x_ref[pl.ds(r, chunk), :].astype(compute_dtype)        # VPU cast, free filler
        h = jnp.dot(xc, w1, preferred_element_type=jnp.float32)     # MXU, f32 accumulate
        h = jnp.maximum(h + b1, 0.0)                                 # bias + ReLU in f32
        # TODO(synk): training-mode Dropout(0.1) omitted (identity / eval semantics).
        y = jnp.dot(h.astype(compute_dtype), w2,
                    preferred_element_type=jnp.float32)              # MXU, no h transpose
        o_ref[pl.ds(r, chunk), :] = (y + b2).astype(o_ref.dtype)
        return carry

    lax.fori_loop(0, n_chunks, body, 0, unroll=True)


def qa_prediction_head(x, w1, b1, w2, b2, *,
                       compute_dtype=jnp.bfloat16, tile_n=None):
    """x: [batch, seq, input_size] -> logits [batch, seq, num_outputs].

    w1: [input_size, hidden], b1: [hidden], w2: [hidden, num_outputs], b2: [num_outputs].
    compute_dtype controls the MXU input dtype (bf16 default, f32 for exactness);
    accumulation, bias add and ReLU are always f32.
    """
    batch, seq, input_size = x.shape
    hidden = w1.shape[1]
    num_outputs = w2.shape[1]
    n = batch * seq
    out_dtype = x.dtype
    out_bytes = jnp.dtype(out_dtype).itemsize
    w_bytes = jnp.dtype(compute_dtype).itemsize

    if tile_n is None:
        tile_n = _choose_tile_n(n, input_size, hidden, num_outputs, out_bytes)
    chunk = _SUBCHUNK if tile_n % _SUBCHUNK == 0 else tile_n
    grid = (pl.cdiv(n, tile_n),)

    # No wrapper-side cast or pad of x: reshape is metadata-only, the bf16 cast
    # happens in-kernel, and the ragged last row tile is masked by Pallas.
    x2d = x.reshape(n, input_size)
    w1c = w1.astype(compute_dtype)                        # [input_size, hidden]
    w2c = w2.astype(compute_dtype)                        # [hidden, num_outputs]
    b1r = b1.reshape(1, hidden).astype(jnp.float32)
    b2r = b2.reshape(1, num_outputs).astype(jnp.float32)

    # Actual VMEM working set: double-buffered x/out tiles + resident weights +
    # per-chunk intermediates; 2x margin, capped under v7x's 64 MiB per-core VMEM.
    vmem_bytes = (2 * tile_n * (input_size * 4 + num_outputs * out_bytes)
                  + 2 * ((input_size * hidden + hidden * num_outputs) * w_bytes
                         + (hidden + num_outputs) * 4)
                  + chunk * (input_size * w_bytes + hidden * (4 + w_bytes)
                             + num_outputs * 4))
    vmem_limit = int(min(64 * 1024 * 1024, max(4 * 1024 * 1024, 2 * vmem_bytes)))

    flops = 2 * n * (input_size * hidden + hidden * num_outputs)
    bytes_accessed = (n * input_size * x.dtype.itemsize
                      + n * num_outputs * out_bytes
                      + (input_size * hidden + hidden * num_outputs) * w_bytes
                      + (hidden + num_outputs) * 4)

    kernel = functools.partial(qa_head_kernel, chunk=chunk,
                               compute_dtype=compute_dtype)

    out = pl.pallas_call(
        kernel,
        out_shape=jax.ShapeDtypeStruct((n, num_outputs), out_dtype),
        grid_spec=pltpu.PrefetchScalarGridSpec(
            num_scalar_prefetch=0,
            grid=grid,
            in_specs=[
                pl.BlockSpec((tile_n, input_size), lambda i: (i, 0)),     # x row tile
                pl.BlockSpec((input_size, hidden), lambda i: (0, 0)),     # W1 (resident)
                pl.BlockSpec((1, hidden), lambda i: (0, 0)),              # b1 (resident)
                pl.BlockSpec((hidden, num_outputs), lambda i: (0, 0)),    # W2 (resident)
                pl.BlockSpec((1, num_outputs), lambda i: (0, 0)),         # b2 (resident)
            ],
            out_specs=pl.BlockSpec((tile_n, num_outputs), lambda i: (i, 0)),
        ),
        compiler_params=pltpu.CompilerParams(
            dimension_semantics=("parallel",),       # shard row tiles across TCs (v7x)
            vmem_limit_bytes=vmem_limit),
        cost_estimate=pl.CostEstimate(flops=int(flops), transcendentals=0,
                                      bytes_accessed=int(bytes_accessed)),
    )(x2d, w1c, b1r, w2c, b2r)

    return out.reshape(batch, seq, num_outputs)


def xavier_uniform(key, fan_in, fan_out, dtype=jnp.float32):
    """Matches torch.nn.init.xavier_uniform_ bound = sqrt(6/(fan_in+fan_out)).

    Returned shape is [fan_in, fan_out] (transposed vs PyTorch's [out, in]),
    ready for row @ W in the kernel.
    """
    bound = math.sqrt(6.0 / (fan_in + fan_out))
    return jax.random.uniform(key, (fan_in, fan_out), dtype=dtype,
                              minval=-bound, maxval=bound)


def _reference(x, w1, b1, w2, b2):
    n = x.shape[0] * x.shape[1]
    h = jnp.maximum(x.reshape(n, -1) @ w1 + b1[None, :], 0.0)
    y = h @ w2 + b2[None, :]
    return y.reshape(x.shape[0], x.shape[1], -1)


if __name__ == "__main__":
    # Small shapes consistent with the module: input_size=32, hidden=64, outputs=2
    batch, seq, input_size = 2, 8, 32
    hidden_size, num_outputs = 64, 2

    key = jax.random.PRNGKey(0)
    kx, kw1, kw2, kx2 = jax.random.split(key, 4)

    x = jax.random.normal(kx, (batch, seq, input_size), dtype=jnp.float32)

    w1 = xavier_uniform(kw1, input_size, hidden_size)        # [in, hidden]
    b1 = jnp.zeros((hidden_size,), dtype=jnp.float32)
    w2 = xavier_uniform(kw2, hidden_size, num_outputs)       # [hidden, out]
    b2 = jnp.zeros((num_outputs,), dtype=jnp.float32)

    ref = _reference(x, w1, b1, w2, b2)

    # Exact f32 path: tight tolerance.
    logits_f32 = qa_prediction_head(x, w1, b1, w2, b2, compute_dtype=jnp.float32)
    jax.block_until_ready(logits_f32)
    assert logits_f32.shape == (batch, seq, num_outputs)
    assert jnp.allclose(logits_f32, ref, atol=1e-5, rtol=1e-5)

    # Default fast path (bf16 MXU inputs, f32 accumulation): looser tolerance.
    logits_bf16 = qa_prediction_head(x, w1, b1, w2, b2)
    jax.block_until_ready(logits_bf16)
    assert logits_bf16.shape == (batch, seq, num_outputs)
    assert jnp.allclose(logits_bf16, ref, atol=5e-2, rtol=5e-2)

    # Secondary check: exercises the multi-tile grid, the inner sub-chunk loop
    # and the ragged (masked) last row tile.
    b2_, s2_ = 3, 500                                        # n = 1500 -> 2 tiles of 768
    x_big = jax.random.normal(kx2, (b2_, s2_, input_size), dtype=jnp.float32)
    ref_big = _reference(x_big, w1, b1, w2, b2)
    out_big = qa_prediction_head(x_big, w1, b1, w2, b2, compute_dtype=jnp.float32)
    jax.block_until_ready(out_big)
    assert out_big.shape == (b2_, s2_, num_outputs)
    assert jnp.allclose(out_big, ref_big, atol=1e-5, rtol=1e-5)

    print("KERNEL_OK")
</pallas_src>

<mosaic_0001>
module attributes {stable_mosaic.version = 11 : i64} {
  func.func @qa_head_kernel(%arg0: i32, %arg1: memref<16x32xf32, #tpu.memory_space<vmem>>, %arg2: memref<32x64xf32, #tpu.memory_space<vmem>>, %arg3: memref<1x64xf32, #tpu.memory_space<vmem>>, %arg4: memref<64x2xf32, #tpu.memory_space<vmem>>, %arg5: memref<1x2xf32, #tpu.memory_space<vmem>>, %arg6: memref<16x2xf32, #tpu.memory_space<vmem>>) attributes {dimension_semantics = [#tpu.dimension_semantics<parallel>], iteration_bounds = array<i64: 1>, scalar_prefetch = 0 : i64, scratch_operands = 0 : i64, tpu.core_type = #tpu.core_type<tc>, window_params = [{transform_indices = @transform_0, window_bounds = array<i64: 16, 32>}, {pipeline_mode = #tpu.pipeline_mode<synchronous>, transform_indices = @transform_1, window_bounds = array<i64: 32, 64>}, {pipeline_mode = #tpu.pipeline_mode<synchronous>, transform_indices = @transform_2, window_bounds = array<i64: 1, 64>}, {pipeline_mode = #tpu.pipeline_mode<synchronous>, transform_indices = @transform_3, window_bounds = array<i64: 64, 2>}, {pipeline_mode = #tpu.pipeline_mode<synchronous>, transform_indices = @transform_4, window_bounds = array<i64: 1, 2>}, {transform_indices = @transform_5, window_bounds = array<i64: 16, 2>}]} {
    %c0 = arith.constant 0 : index
    %c0_0 = arith.constant 0 : index
    %0 = vector.load %arg2[%c0, %c0_0] : memref<32x64xf32, #tpu.memory_space<vmem>>, vector<32x64xf32>
    %c0_1 = arith.constant 0 : index
    %c0_2 = arith.constant 0 : index
    %1 = vector.load %arg3[%c0_1, %c0_2] : memref<1x64xf32, #tpu.memory_space<vmem>>, vector<1x64xf32>
    %c0_3 = arith.constant 0 : index
    %c0_4 = arith.constant 0 : index
    %2 = vector.load %arg4[%c0_3, %c0_4] : memref<64x2xf32, #tpu.memory_space<vmem>>, vector<64x2xf32>
    %c0_5 = arith.constant 0 : index
    %c0_6 = arith.constant 0 : index
    %3 = vector.load %arg5[%c0_5, %c0_6] : memref<1x2xf32, #tpu.memory_space<vmem>>, vector<1x2xf32>
    %c0_i32 = arith.constant 0 : i32
    %c16_i32 = arith.constant 16 : i32
    %4 = arith.muli %c0_i32, %c16_i32 : i32
    %5 = tpu.assume_multiple %4, 16 : i32
    %6 = arith.index_cast %5 : i32 to index
    %c0_7 = arith.constant 0 : index
    %7 = vector.load %arg1[%6, %c0_7] : memref<16x32xf32, #tpu.memory_space<vmem>>, vector<16x32xf32>
    %cst = arith.constant dense<0.000000e+00> : vector<16x64xf32>
    %8 = tpu.matmul %7, %0, %cst {dimension_numbers = #tpu.dot_dimension_numbers<[1], [0], [0], [1], [0, 0, 1, 1], [], []>} : vector<16x32xf32>, vector<32x64xf32>, vector<16x64xf32> -> vector<16x64xf32>
    %9 = vector.broadcast %1 : vector<1x64xf32> to vector<16x64xf32>
    %10 = arith.addf %8, %9 : vector<16x64xf32>
    %cst_8 = arith.constant 0.000000e+00 : f32
    %11 = vector.broadcast %cst_8 : f32 to vector<16x64xf32>
    %12 = arith.maximumf %10, %11 : vector<16x64xf32>
    %cst_9 = arith.constant dense<0.000000e+00> : vector<16x2xf32>
    %13 = tpu.matmul %12, %2, %cst_9 {dimension_numbers = #tpu.dot_dimension_numbers<[1], [0], [0], [1], [0, 0, 1, 1], [], []>} : vector<16x64xf32>, vector<64x2xf32>, vector<16x2xf32> -> vector<16x2xf32>
    %14 = vector.broadcast %3 : vector<1x2xf32> to vector<16x2xf32>
    %15 = arith.addf %13, %14 : vector<16x2xf32>
    %16 = arith.index_cast %5 : i32 to index
    %c0_10 = arith.constant 0 : index
    %17 = vector.load %arg6[%16, %c0_10] : memref<16x2xf32, #tpu.memory_space<vmem>>, vector<16x2xf32>
    tpu.vector_store %arg6[%16, %c0_10], %15 {strides = array<i32>} : memref<16x2xf32, #tpu.memory_space<vmem>>, vector<16x2xf32>,
    %c1_i32 = arith.constant 1 : i32
    return
  }
  func.func @transform_0(%arg0: i32) -> (i32, i32) {
    %c0_i32 = arith.constant 0 : i32
    %c0_i32_0 = arith.constant 0 : i32
    return %arg0, %c0_i32 : i32, i32
  }
  func.func @transform_1(%arg0: i32) -> (i32, i32) {
    %c0_i32 = arith.constant 0 : i32
    %c0_i32_0 = arith.constant 0 : i32
    %c0_i32_1 = arith.constant 0 : i32
    return %c0_i32, %c0_i32_0 : i32, i32
  }
  func.func @transform_2(%arg0: i32) -> (i32, i32) {
    %c0_i32 = arith.constant 0 : i32
    %c0_i32_0 = arith.constant 0 : i32
    %c0_i32_1 = arith.constant 0 : i32
    return %c0_i32, %c0_i32_0 : i32, i32
  }
  func.func @transform_3(%arg0: i32) -> (i32, i32) {
    %c0_i32 = arith.constant 0 : i32
    %c0_i32_0 = arith.constant 0 : i32
    %c0_i32_1 = arith.constant 0 : i32
    return %c0_i32, %c0_i32_0 : i32, i32
  }
  func.func @transform_4(%arg0: i32) -> (i32, i32) {
    %c0_i32 = arith.constant 0 : i32
    %c0_i32_0 = arith.constant 0 : i32
    %c0_i32_1 = arith.constant 0 : i32
    return %c0_i32, %c0_i32_0 : i32, i32
  }
  func.func @transform_5(%arg0: i32) -> (i32, i32) {
    %c0_i32 = arith.constant 0 : i32
    %c0_i32_0 = arith.constant 0 : i32
    return %arg0, %c0_i32 : i32, i32
  }
}

</mosaic_0001>

<bundles_post_ra>
// kernel: tpu_custom_call.1
= control target key start
LH: loop header
LB: loop body
LE: loop exit
PB: predicated region body
PF: predicated region fallthrough
CT: control target
= control target key end

     0   :  { %vm42_vm0 = vcmask 261120   ;;  %vm132_vm1 = vcmask 523264   ;;  %vm214_vm2 = vcmask 15360   ;;  %s383_s1 = inlined_call_operand.vmem [shape: f32[32,64], index: 1, kind: input, shape index: {}]   ;;  %s384_s0 = inlined_call_operand.vmem [shape: f32[16,32], index: 0, kind: input, shape index: {}]   ;;  %s385_s3 = inlined_call_operand.vmem [shape: f32[64,2], index: 3, kind: input, shape index: {}]   ;;  %s386_s2 = inlined_call_operand.vmem [shape: f32[1,64], index: 2, kind: input, shape index: {}]   ;;  %s387_s4 = inlined_call_operand.vmem [shape: f32[1,2], index: 4, kind: input, shape index: {}]   ;;  %s388_s5 = inlined_call_operand.vmem [shape: f32[16,2], index: 5, kind: output, shape index: {}]  }
   0x1   :  { %v20_v0 = vld [vmem:[%s383_s1] sm:$0xff]  ;;  %v21_v1 = vld [vmem:[%s383_s1 + $0x8] sm:$0xff]  ;;  %v22_v2 = vld [vmem:[%s383_s1 + $0x10] sm:$0xff] }
   0x2   :  { %v273_v3 = vpack.c.bf16 %v21_v1, %v20_v0  ;;  %v23_v4 = vld [vmem:[%s383_s1 + $0x18] sm:$0xff]  ;;  %v34_v5 = vld [vmem:[%s384_s0] sm:$0xff]  ;;  %v26_v8 = vld [vmem:[%s385_s3 + $0x8] sm:$0xff] }
   0x3   :  { %v277_v6 = vpack.c.bf16 %v23_v4, %v22_v2  ;;  %251 = vmatprep.mubr.msk.f32.mxu0 %vm42_vm0, %v34_v5  ;;  %v25_v7 = vld [vmem:[%s385_s3] sm:$0xff]  ;;  %v27_v9 = vld [vmem:[%s385_s3 + $0x10] sm:$0xff]  ;;  %v28_v11 = vld [vmem:[%s385_s3 + $0x18] sm:$0xff] }
   0x4   :  { %274 = vmatprep.subr.bf16.mxu0 %v273_v3  ;;  %v281_v10 = vpack.c.bf16 %v26_v8, %v25_v7  ;;  %v285_v12 = vpack.c.bf16 %v28_v11, %v27_v9  ;;  %v29_v13 = vld [vmem:[%s385_s3 + $0x20] sm:$0xff]  ;;  %v30_v14 = vld [vmem:[%s385_s3 + $0x28] sm:$0xff]  ;;  %v31_v17 = vld [vmem:[%s385_s3 + $0x30] sm:$0xff] }
   0x5   :  { %276 = vmatpush3.bf16.msra.mxu0 %v273_v3  ;;  %v289_v15 = vpack.c.bf16 %v30_v14, %v29_v13  ;;  %v35_v16 = vld [vmem:[%s384_s0 + $0x8] sm:$0xff]  ;;  %v32_v18 = vld [vmem:[%s385_s3 + $0x38] sm:$0xff]  ;;  %v221_v20 = vld [vmem:[%s386_s2] ss:$0 sm:$0xff] }
   0x6   :  { %278 = vmatprep.subr.bf16.mxu0 %v277_v6  ;;  %282 = vmatprep.subr.bf16.mxu1 %v281_v10  ;;  %v293_v19 = vpack.c.bf16 %v32_v18, %v31_v17  ;;  %v224_v27 = vld [vmem:[%s387_s4] ss:$0 sm:$0xff] }
   0x7   :  { %284 = vmatpush3.bf16.msra.mxu1 %v281_v10 }
   0x8   :  { %286 = vmatprep.subr.bf16.mxu1 %v285_v12 }
   0x9   :  { %280 = vmatpush3.bf16.msra.mxu0 %v277_v6 }
   0xb   :  { %288 = vmatpush3.bf16.msra.mxu1 %v285_v12 }
   0xc   :  { %252 = vmatmul.mubr.msk.f32.vlgmr.msra.gmra.mrb[0].mxu0 %vm42_vm0, %v35_v16  ;;  %290 = vmatprep.subr.bf16.mxu1 %v289_v15 }
   0xf   :  { %292 = vmatpush3.bf16.msra.mxu1 %v289_v15 }
  0x10   :  { %294 = vmatprep.subr.bf16.mxu1 %v293_v19 }
  0x13   :  { %296 = vmatpush3.bf16.msra.mxu1 %v293_v19 }
  0xdf   :  { %v253_v21 = vpop.f32.mrb[0].mxu0 }
  0xe0   :  { %v121_v22 = vadd.f32 %v253_v21, %v221_v20  ;;  %v115_v23 = vpop.f32.mrb[1].mxu0 }
  0xe1   :  { %v116_v24 = vadd.f32 %v221_v20, %v115_v23 }
  0xe2   :  { %v125_v26 = vmax.f32 %v121_v22, 0.0 }
  0xe3   :  { %v124_v25 = vmax.f32 %v116_v24, 0.0 }
  0xe5   :  { %270 = vmatprep.mubr.msk.f32.mxu1 %vm132_vm1, %v124_v25 }
  0xe6   :  { %271 = vmatmul.mubr.msk.f32.vlgmr.msra.gmra.mrb[0].mxu1 %vm132_vm1, %v125_v26 }
 0x1b9   :  { %v272_v28 = vpop.f32.mrb[0].mxu1 }
 0x1ba   :  { %v211_v29 = vadd.f32 %v272_v28, %v224_v27  ;;  %v205_v30 = vpop.f32.mrb[1].mxu1 }
 0x1bb   :  { %v206_v31 = vadd.f32 %v224_v27, %v205_v30 }
 0x1bc   :  { %216 = vst.msk [vmem:[%s388_s5 + $0x8] sm:$0xff] %vm214_vm2, %v211_v29 }
 0x1bd   :  { %215 = vst.msk [vmem:[%s388_s5] sm:$0xff] %vm214_vm2, %v206_v31 }

</bundles_post_ra>
